<compile_context>
chip_gen: v7x
topology: tpu7x:2x2x1
jax: 0.10.0
libtpu: 0.0.40
codegen_flags: <defaults>
</compile_context>

<pallas_src>
import functools

import jax
import jax.numpy as jnp
from jax.experimental import pallas as pl
from jax.experimental.pallas import tpu as pltpu

_LANE = 128          # hidden/output feature dims padded to the 128-lane width
_SUBLANE_BF16 = 16   # bf16 tiles want 16 sublanes -> batch tiles rounded to this


def _round_up(n: int, m: int) -> int:
    return ((n + m - 1) // m) * m


def _fused_mlp_kernel(x_ref, *refs, n_layers: int):
    """refs = (w0, b0, w1, b1, ..., w_{L-1}, b_{L-1}, o_ref).

    x block : bf16 [tb, d_in]            (d_in unpadded; block last dim == full dim)
    w_i     : bf16 [K_i, N_i_pad]        (VMEM-resident across the batch grid)
    b_i     : f32  [1,  N_i_pad]
    Matmuls run on the MXU with bf16 operands + f32 accumulation; bias/ReLU stay in
    f32 (v5e has no bf16 VPU path).  Dropout == identity in eval mode.
    """
    o_ref = refs[-1]
    wb = refs[:-1]
    h = x_ref[...]                                           # bf16 [tb, d_in]
    for li in range(n_layers):
        w = wb[2 * li][...]                                  # bf16
        b = wb[2 * li + 1][...]                              # f32
        y = jnp.dot(h.astype(jnp.bfloat16), w,
                    preferred_element_type=jnp.float32) + b  # f32 accumulate
        if li < n_layers - 1:                                # hidden block: Linear -> ReLU -> Dropout(id)
            y = jnp.maximum(y, 0.0)
        h = y
    o_ref[...] = h.astype(o_ref.dtype)                       # bf16 writeback


def prepare_params(params, head):
    """One-time parameter prep (hoisted off the hot path).

    Returns (ws, bs) with ws[i] bf16 [K_i, N_i_pad] and bs[i] f32 [1, N_i_pad].
    The first layer's K dim is left unpadded (it matches x's true feature width);
    every output dim is zero-padded to 128 lanes so hidden matmuls and the output
    store are lane-dense.  Padded columns carry exact zeros through matmul/bias/ReLU
    and are therefore mathematically inert.
    """
    layers = list(params) + [head]
    ws, bs = [], []
    prev_pad = None
    for i, (w, b) in enumerate(layers):
        k_in = w.shape[0] if i == 0 else prev_pad
        n_out = w.shape[1]
        n_pad = _round_up(n_out, _LANE)
        wp = jnp.zeros((k_in, n_pad), jnp.float32).at[: w.shape[0], :n_out].set(w)
        bp = jnp.zeros((1, n_pad), jnp.float32).at[:, :n_out].set(b.reshape(1, -1))
        ws.append(wp.astype(jnp.bfloat16))
        bs.append(bp)
        prev_pad = n_pad
    return tuple(ws), tuple(bs)


def mlp_forward(x, ws, bs, *, d_out, batch_tile: int = 1024, return_padded: bool = False):
    """x: [B, d_in]; (ws, bs) from prepare_params(); returns bf16 [B, d_out].

    Jittable (all shape logic is static under jit).  Set return_padded=True to get
    the lane-dense padded [B_pad, d_out_pad] buffer with no post-kernel slice copy.
    """
    B, d_in = x.shape
    n_layers = len(ws)
    assert ws[0].shape[0] == d_in, "prepare_params d_in mismatch"
    d_out_pad = ws[-1].shape[1]
    dims_pad = [w.shape[1] for w in ws]

    x = x.astype(jnp.bfloat16)                       # bf16 activation stream into the kernel

    # --- adaptive batch tiling (bounded padding waste; >=2 tiles for v7x megacore) ---
    num_tiles = max(1, pl.cdiv(B, batch_tile))
    if num_tiles < 2 and B > _SUBLANE_BF16:
        num_tiles = 2
    tb = _round_up(pl.cdiv(B, num_tiles), _SUBLANE_BF16)

    # --- VMEM budget: respect the chip's real capacity (v7x: 64 MiB / TensorCore) ---
    try:
        vmem_cap = int(0.75 * pltpu.get_tpu_info().vmem_capacity_bytes)
    except Exception:
        vmem_cap = int(0.75 * (64 << 20))            # conservative v7x-per-core fallback
    param_bytes = sum(w.size * 2 for w in ws) + sum(b.size * 4 for b in bs)

    def _footprint(t):
        io = 2 * (t * d_in * 2 + t * d_out_pad * 2)  # double-buffered bf16 in/out tiles
        inter = 2 * t * max(dims_pad) * 4            # live f32 activations inside the body
        return 2 * param_bytes + io + inter + (2 << 20)

    while _footprint(tb) > vmem_cap and tb > _SUBLANE_BF16:
        tb = max(_SUBLANE_BF16, _round_up(tb // 2, _SUBLANE_BF16))

    num_tiles = pl.cdiv(B, tb)
    B_pad = num_tiles * tb
    if B_pad != B:
        # Row-only padding, in bf16 (no lane-inflated f32 copy of x).  Padded rows
        # produce junk (bias through ReLU) and are sliced off below.
        x = jnp.zeros((B_pad, d_in), jnp.bfloat16).at[:B].set(x)

    vmem_limit = int(min(max(_footprint(tb), 16 << 20), vmem_cap))

    in_specs = [pl.BlockSpec((tb, d_in), lambda i: (i, 0))]
    flat_wb = []
    for w, b in zip(ws, bs):
        # Constant block index => parameters stay resident in VMEM across the grid.
        in_specs.append(pl.BlockSpec(w.shape, lambda i: (0, 0)))
        in_specs.append(pl.BlockSpec(b.shape, lambda i: (0, 0)))
        flat_wb += [w, b]
    out_spec = pl.BlockSpec((tb, d_out_pad), lambda i: (i, 0))

    flops = 2 * B_pad * sum(w.shape[0] * w.shape[1] for w in ws)
    bytes_accessed = x.size * 2 + param_bytes + B_pad * d_out_pad * 2

    kernel = functools.partial(_fused_mlp_kernel, n_layers=n_layers)
    out_pad = pl.pallas_call(
        kernel,
        out_shape=jax.ShapeDtypeStruct((B_pad, d_out_pad), jnp.bfloat16),
        grid=(num_tiles,),
        in_specs=in_specs,
        out_specs=out_spec,
        compiler_params=pltpu.CompilerParams(
            dimension_semantics=("parallel",),
            vmem_limit_bytes=vmem_limit,
        ),
        cost_estimate=pl.CostEstimate(
            flops=flops, transcendentals=0, bytes_accessed=bytes_accessed),
    )(x, *flat_wb)

    if return_padded:
        return out_pad
    return out_pad[:B, :d_out]


def init_mlp_params(key, d_in, d_layers, d_out):
    """Deterministic parameter init mimicking nn.Linear (uniform +/- 1/sqrt(fan_in))."""
    dims = [d_in] + list(d_layers)
    params = []
    for i in range(len(d_layers)):
        fan_in, fan_out = dims[i], dims[i + 1]
        key, kw, kb = jax.random.split(key, 3)
        bound = 1.0 / jnp.sqrt(fan_in)
        w = jax.random.uniform(kw, (fan_in, fan_out), jnp.float32, -bound, bound)
        b = jax.random.uniform(kb, (1, fan_out), jnp.float32, -bound, bound)
        params.append((w, b))
    fan_in = d_layers[-1] if d_layers else d_in
    key, kw, kb = jax.random.split(key, 3)
    bound = 1.0 / jnp.sqrt(fan_in)
    head_w = jax.random.uniform(kw, (fan_in, d_out), jnp.float32, -bound, bound)
    head_b = jax.random.uniform(kb, (1, d_out), jnp.float32, -bound, bound)
    return params, (head_w, head_b)


if __name__ == "__main__":
    # MLP.make_baseline(d_in=32, d_layers=[64, 64], dropout=0.0, d_out=16), batch=8
    B, d_in, d_layers, d_out = 8, 32, [64, 64], 16

    key = jax.random.PRNGKey(0)
    key, kx = jax.random.split(key)
    x = jax.random.normal(kx, (B, d_in), jnp.float32)

    params, head = init_mlp_params(key, d_in, d_layers, d_out)

    # One-time parameter prep (padding + bf16 cast off the steady-state path).
    ws, bs = prepare_params(params, head)

    fwd = jax.jit(functools.partial(mlp_forward, d_out=d_out))
    out = jax.block_until_ready(fwd(x, ws, bs))
    assert out.shape == (B, d_out)
    out_f32 = out.astype(jnp.float32)

    # Reference 1: same math as the kernel path (bf16 MXU operands, f32 accumulate).
    ref_bf16 = x
    for (w, b) in params:
        ref_bf16 = jnp.maximum(
            jnp.dot(ref_bf16.astype(jnp.bfloat16), w.astype(jnp.bfloat16),
                    preferred_element_type=jnp.float32) + b, 0.0)
    ref_bf16 = jnp.dot(ref_bf16.astype(jnp.bfloat16), head[0].astype(jnp.bfloat16),
                       preferred_element_type=jnp.float32) + head[1]
    assert jnp.allclose(out_f32, ref_bf16, atol=2e-2, rtol=2e-2), "bf16-path mismatch"

    # Reference 2: full f32 math (loose tolerance covers bf16 operand/output rounding).
    ref_f32 = x
    for (w, b) in params:
        ref_f32 = jnp.maximum(ref_f32 @ w + b, 0.0)
    ref_f32 = ref_f32 @ head[0] + head[1]
    assert jnp.allclose(out_f32, ref_f32, atol=8e-2, rtol=8e-2), "f32 reference mismatch"

    print("KERNEL_OK")
</pallas_src>

<mosaic_0001>
module attributes {stable_mosaic.version = 11 : i64} {
  func.func @_fused_mlp_kernel(%arg0: i32, %arg1: memref<16x32xbf16, #tpu.memory_space<vmem>>, %arg2: memref<32x128xbf16, #tpu.memory_space<vmem>>, %arg3: memref<1x128xf32, #tpu.memory_space<vmem>>, %arg4: memref<128x128xbf16, #tpu.memory_space<vmem>>, %arg5: memref<1x128xf32, #tpu.memory_space<vmem>>, %arg6: memref<128x128xbf16, #tpu.memory_space<vmem>>, %arg7: memref<1x128xf32, #tpu.memory_space<vmem>>, %arg8: memref<16x128xbf16, #tpu.memory_space<vmem>>) attributes {dimension_semantics = [#tpu.dimension_semantics<parallel>], iteration_bounds = array<i64: 1>, scalar_prefetch = 0 : i64, scratch_operands = 0 : i64, tpu.core_type = #tpu.core_type<tc>, window_params = [{transform_indices = @transform_0, window_bounds = array<i64: 16, 32>}, {pipeline_mode = #tpu.pipeline_mode<synchronous>, transform_indices = @transform_1, window_bounds = array<i64: 32, 128>}, {pipeline_mode = #tpu.pipeline_mode<synchronous>, transform_indices = @transform_2, window_bounds = array<i64: 1, 128>}, {pipeline_mode = #tpu.pipeline_mode<synchronous>, transform_indices = @transform_3, window_bounds = array<i64: 128, 128>}, {pipeline_mode = #tpu.pipeline_mode<synchronous>, transform_indices = @transform_4, window_bounds = array<i64: 1, 128>}, {pipeline_mode = #tpu.pipeline_mode<synchronous>, transform_indices = @transform_5, window_bounds = array<i64: 128, 128>}, {pipeline_mode = #tpu.pipeline_mode<synchronous>, transform_indices = @transform_6, window_bounds = array<i64: 1, 128>}, {transform_indices = @transform_7, window_bounds = array<i64: 16, 128>}]} {
    %c0 = arith.constant 0 : index
    %c0_0 = arith.constant 0 : index
    %0 = vector.load %arg1[%c0, %c0_0] : memref<16x32xbf16, #tpu.memory_space<vmem>>, vector<16x32xbf16>
    %c0_1 = arith.constant 0 : index
    %c0_2 = arith.constant 0 : index
    %1 = vector.load %arg2[%c0_1, %c0_2] : memref<32x128xbf16, #tpu.memory_space<vmem>>, vector<32x128xbf16>
    %c0_3 = arith.constant 0 : index
    %c0_4 = arith.constant 0 : index
    %2 = vector.load %arg3[%c0_3, %c0_4] : memref<1x128xf32, #tpu.memory_space<vmem>>, vector<1x128xf32>
    %cst = arith.constant dense<0.000000e+00> : vector<16x128xf32>
    %3 = tpu.matmul %0, %1, %cst {dimension_numbers = #tpu.dot_dimension_numbers<[1], [0], [0], [1], [0, 0, 1, 1], [], []>} : vector<16x32xbf16>, vector<32x128xbf16>, vector<16x128xf32> -> vector<16x128xf32>
    %4 = vector.broadcast %2 : vector<1x128xf32> to vector<16x128xf32>
    %5 = arith.addf %3, %4 : vector<16x128xf32>
    %cst_5 = arith.constant 0.000000e+00 : f32
    %6 = vector.broadcast %cst_5 : f32 to vector<16x128xf32>
    %7 = arith.maximumf %5, %6 : vector<16x128xf32>
    %c0_6 = arith.constant 0 : index
    %c0_7 = arith.constant 0 : index
    %8 = vector.load %arg4[%c0_6, %c0_7] : memref<128x128xbf16, #tpu.memory_space<vmem>>, vector<128x128xbf16>
    %c0_8 = arith.constant 0 : index
    %c0_9 = arith.constant 0 : index
    %9 = vector.load %arg5[%c0_8, %c0_9] : memref<1x128xf32, #tpu.memory_space<vmem>>, vector<1x128xf32>
    %10 = arith.truncf %7 : vector<16x128xf32> to vector<16x128xbf16>
    %cst_10 = arith.constant dense<0.000000e+00> : vector<16x128xf32>
    %11 = tpu.matmul %10, %8, %cst_10 {dimension_numbers = #tpu.dot_dimension_numbers<[1], [0], [0], [1], [0, 0, 1, 1], [], []>} : vector<16x128xbf16>, vector<128x128xbf16>, vector<16x128xf32> -> vector<16x128xf32>
    %12 = vector.broadcast %9 : vector<1x128xf32> to vector<16x128xf32>
    %13 = arith.addf %11, %12 : vector<16x128xf32>
    %cst_11 = arith.constant 0.000000e+00 : f32
    %14 = vector.broadcast %cst_11 : f32 to vector<16x128xf32>
    %15 = arith.maximumf %13, %14 : vector<16x128xf32>
    %c0_12 = arith.constant 0 : index
    %c0_13 = arith.constant 0 : index
    %16 = vector.load %arg6[%c0_12, %c0_13] : memref<128x128xbf16, #tpu.memory_space<vmem>>, vector<128x128xbf16>
    %c0_14 = arith.constant 0 : index
    %c0_15 = arith.constant 0 : index
    %17 = vector.load %arg7[%c0_14, %c0_15] : memref<1x128xf32, #tpu.memory_space<vmem>>, vector<1x128xf32>
    %18 = arith.truncf %15 : vector<16x128xf32> to vector<16x128xbf16>
    %cst_16 = arith.constant dense<0.000000e+00> : vector<16x128xf32>
    %19 = tpu.matmul %18, %16, %cst_16 {dimension_numbers = #tpu.dot_dimension_numbers<[1], [0], [0], [1], [0, 0, 1, 1], [], []>} : vector<16x128xbf16>, vector<128x128xbf16>, vector<16x128xf32> -> vector<16x128xf32>
    %20 = vector.broadcast %17 : vector<1x128xf32> to vector<16x128xf32>
    %21 = arith.addf %19, %20 : vector<16x128xf32>
    %22 = arith.truncf %21 : vector<16x128xf32> to vector<16x128xbf16>
    %c0_17 = arith.constant 0 : index
    %c0_18 = arith.constant 0 : index
    %23 = vector.load %arg8[%c0_17, %c0_18] : memref<16x128xbf16, #tpu.memory_space<vmem>>, vector<16x128xbf16>
    tpu.vector_store %arg8[%c0_17, %c0_18], %22 {strides = array<i32>} : memref<16x128xbf16, #tpu.memory_space<vmem>>, vector<16x128xbf16>,
    return
  }
  func.func @transform_0(%arg0: i32) -> (i32, i32) {
    %c0_i32 = arith.constant 0 : i32
    %c0_i32_0 = arith.constant 0 : i32
    return %arg0, %c0_i32 : i32, i32
  }
  func.func @transform_1(%arg0: i32) -> (i32, i32) {
    %c0_i32 = arith.constant 0 : i32
    %c0_i32_0 = arith.constant 0 : i32
    %c0_i32_1 = arith.constant 0 : i32
    return %c0_i32, %c0_i32_0 : i32, i32
  }
  func.func @transform_2(%arg0: i32) -> (i32, i32) {
    %c0_i32 = arith.constant 0 : i32
    %c0_i32_0 = arith.constant 0 : i32
    %c0_i32_1 = arith.constant 0 : i32
    return %c0_i32, %c0_i32_0 : i32, i32
  }
  func.func @transform_3(%arg0: i32) -> (i32, i32) {
    %c0_i32 = arith.constant 0 : i32
    %c0_i32_0 = arith.constant 0 : i32
    %c0_i32_1 = arith.constant 0 : i32
    return %c0_i32, %c0_i32_0 : i32, i32
  }
  func.func @transform_4(%arg0: i32) -> (i32, i32) {
    %c0_i32 = arith.constant 0 : i32
    %c0_i32_0 = arith.constant 0 : i32
    %c0_i32_1 = arith.constant 0 : i32
    return %c0_i32, %c0_i32_0 : i32, i32
  }
  func.func @transform_5(%arg0: i32) -> (i32, i32) {
    %c0_i32 = arith.constant 0 : i32
    %c0_i32_0 = arith.constant 0 : i32
    %c0_i32_1 = arith.constant 0 : i32
    return %c0_i32, %c0_i32_0 : i32, i32
  }
  func.func @transform_6(%arg0: i32) -> (i32, i32) {
    %c0_i32 = arith.constant 0 : i32
    %c0_i32_0 = arith.constant 0 : i32
    %c0_i32_1 = arith.constant 0 : i32
    return %c0_i32, %c0_i32_0 : i32, i32
  }
  func.func @transform_7(%arg0: i32) -> (i32, i32) {
    %c0_i32 = arith.constant 0 : i32
    %c0_i32_0 = arith.constant 0 : i32
    return %arg0, %c0_i32 : i32, i32
  }
}

</mosaic_0001>

<bundles_post_ra>
// kernel: mlp_forward.1
= control target key start
LH: loop header
LB: loop body
LE: loop exit
PB: predicated region body
PF: predicated region fallthrough
CT: control target
= control target key end

     0   :  { %12 = vsyncpa [#allocation3], 0  ;;  %s665_s0 = inlined_call_operand.vmem [shape: bf16[16,32], index: 0, kind: input, shape index: {}]   ;;  %s666_s1 = inlined_call_operand.vmem [shape: bf16[32,128], index: 1, kind: input, shape index: {}]   ;;  %s667_s2 = inlined_call_operand.vmem [shape: f32[1,128], index: 2, kind: input, shape index: {}]   ;;  %s668_s3 = inlined_call_operand.hbm [shape: bf16[128,128], index: 3, kind: input, shape index: {}]   ;;  %s669_s4 = inlined_call_operand.vmem [shape: f32[1,128], index: 4, kind: input, shape index: {}]   ;;  %s670_s5 = inlined_call_operand.hbm [shape: bf16[128,128], index: 5, kind: input, shape index: {}]   ;;  %s671_s6 = inlined_call_operand.vmem [shape: f32[1,128], index: 6, kind: input, shape index: {}]   ;;  %s672_s7 = inlined_call_operand.vmem [shape: bf16[16,128], index: 7, kind: output, shape index: {}]  }
   0x1   :  { %13 = vsyncpa [#allocation5], 0  ;;  %s550_s24 = smov [#allocation2]   ;;  %s502_s28 = scalar_lea.hbm %s668_s3, 1024 }
   0x2   :  { %s25_s25 = sshll.u32 %s550_s24, 4  ;;  %p503_p0 = scmp.ne.s32.totalorder %s668_s3, %s502_s28  ;;  %s26_s25 = int_to_ptr.vmem [resolvable:$true] %s25_s25 }
   0x3   :  { %p506_p1 = scmp.lt.u32.totalorder %s502_s28, %s668_s3 }
   0x5   :  { %p508_p2 = pnand %p506_p1, %p503_p0 }
   0x7   :  { %511 = shalt.err (!%p508_p2)
}
   0x8   :  { %s512_s10 = scalar_lea.vmem %s26_s25, 1024  ;;  %p517_p4 = scmp.lt.s32.totalorder %s26_s25, %s26_s25 }
   0x9   :  { %p513_p3 = scmp.ne.s32.totalorder %s26_s25, %s512_s10  ;;  %p518_p5 = scmp.lt.s32.totalorder %s512_s10, %s512_s10 }
   0xb   :  { %p519_p6 = por %p518_p5, %p517_p4 }
   0xd   :  { %p520_p7 = pnand %p519_p6, %p513_p3 }
   0xf   :  { %523 = shalt.err (!%p520_p7)
}
  0x10   :  { %s551_s11 = smov 64   ;;  %s552_s12 = smov 4  }
  0x11   :  { %31 = dma.hbm_to_vmem [thread:$0]  %s668_s3, 1024, %s26_s25, [#allocation3], %s551_s11, %s551_s11, %s552_s12  }
  0x12   :  { %s553_s15 = smov [#allocation4]   ;;  %s524_s19 = scalar_lea.hbm %s670_s5, 1024 }
  0x13   :  { %s39_s16 = sshll.u32 %s553_s15, 4  ;;  %p525_p8 = scmp.ne.s32.totalorder %s670_s5, %s524_s19  ;;  %s40_s16 = int_to_ptr.vmem [resolvable:$true] %s39_s16 }
  0x14   :  { %p528_p9 = scmp.lt.u32.totalorder %s524_s19, %s670_s5 }
  0x16   :  { %p530_p10 = pnand %p528_p9, %p525_p8 }
  0x18   :  { %533 = shalt.err (!%p530_p10)
}
  0x19   :  { %s534_s24 = scalar_lea.vmem %s40_s16, 1024  ;;  %p539_p12 = scmp.lt.s32.totalorder %s40_s16, %s40_s16 }
  0x1a   :  { %p535_p11 = scmp.ne.s32.totalorder %s40_s16, %s534_s24  ;;  %p540_p13 = scmp.lt.s32.totalorder %s534_s24, %s534_s24 }
  0x1c   :  { %p541_p0 = por %p540_p13, %p539_p12 }
  0x1e   :  { %p542_p1 = pnand %p541_p0, %p535_p11 }
  0x20   :  { %545 = shalt.err (!%p542_p1)
}
  0x21   :  { %45 = dma.hbm_to_vmem [thread:$0]  %s670_s5, 1024, %s40_s16, [#allocation5], %s551_s11, %s551_s11, %s552_s12  }
  0x22   :  { %546 = dma.done.wait [#allocation3], 1024  }
  0x23   :  { %547 = vsyncadd [#allocation3], 4294966272 }
  0x24   :  { %548 = dma.done.wait [#allocation5], 1024  }
  0x25   :  { %549 = vsyncadd [#allocation5], 4294966272  ;;  %v554_v0 = vmov 0.0   ;;  %vm555_vm0 = vmmov 0   ;;  %v483_v1 = vld [vmem:[%s666_s1] sm:$0xff]   ;;  %v484_v2 = vld [vmem:[%s666_s1 + $0x8] sm:$0xff]  }
  0x26   :  { %429 = vmatprep.subr.bf16.mxu0 %v554_v0  ;;  %433 = vmatprep.mubr.msk.bf16.mxu0 %vm555_vm0, %v554_v0  ;;  %v486_v3 = vld [vmem:[#allocation2] sm:$0xff]   ;;  %v485_v4 = vld [vmem:[%s665_s0] sm:$0xff]   ;;  %v487_v5 = vld [vmem:[#allocation2 + $0x8] sm:$0xff]   ;;  %vm85_vm1 = vcmask 261120  }
  0x27   :  { %437 = vmatprep.subr.bf16.mxu1 %v554_v0  ;;  %453 = vmatprep.mubr.msk.bf16.mxu1 %vm555_vm0, %v554_v0  ;;  %v488_v6 = vld [vmem:[#allocation2 + $0x10] sm:$0xff]   ;;  %v489_v7 = vld [vmem:[#allocation2 + $0x18] sm:$0xff]   ;;  %v490_v8 = vld [vmem:[#allocation2 + $0x20] sm:$0xff]  }
  0x28   :  { %430 = vmatpush3.bf16.msra.mxu0 %v483_v1  ;;  %438 = vmatpush3.bf16.msra.mxu1 %v486_v3  ;;  %v491_v9 = vld [vmem:[#allocation2 + $0x28] sm:$0xff]   ;;  %v492_v10 = vld [vmem:[#allocation2 + $0x30] sm:$0xff]   ;;  %v493_v11 = vld [vmem:[#allocation2 + $0x38] sm:$0xff]  }
  0x29   :  { %431 = vmatprep.subr.bf16.mxu0 %v554_v0  ;;  %439 = vmatprep.subr.bf16.mxu1 %v554_v0  ;;  %v494_v12 = vld [vmem:[#allocation4] sm:$0xff]   ;;  %v495_v13 = vld [vmem:[#allocation4 + $0x8] sm:$0xff]   ;;  %v496_v14 = vld [vmem:[#allocation4 + $0x10] sm:$0xff]  }
  0x2a   :  { %v497_v15 = vld [vmem:[#allocation4 + $0x18] sm:$0xff]   ;;  %v498_v16 = vld [vmem:[#allocation4 + $0x20] sm:$0xff]   ;;  %v499_v17 = vld [vmem:[#allocation4 + $0x28] sm:$0xff]  }
  0x2b   :  { %v376_v18 = vld [vmem:[%s667_s2] ss:$0 sm:$0xff]  ;;  %v501_v29 = vld [vmem:[#allocation4 + $0x38] sm:$0xff]  }
  0x2c   :  { %432 = vmatpush3.bf16.msra.mxu0 %v484_v2  ;;  %440 = vmatpush3.bf16.msra.mxu1 %v487_v5  ;;  %v500_v28 = vld [vmem:[#allocation4 + $0x30] sm:$0xff]  }
  0x2d   :  { %457 = vmatprep.subr.bf16.mxu0 %v554_v0  ;;  %441 = vmatprep.subr.bf16.mxu1 %v554_v0  ;;  %v381_v30 = vld [vmem:[%s669_s4] ss:$0 sm:$0xff] }
  0x2e   :  { %v390_v40 = vld [vmem:[%s671_s6] ss:$0 sm:$0xff] }
  0x2f   :  { %434 = vmatmul.mubr.msk.bf16.vlgmr.msra.gmra.mrb[0].mxu0 %vm85_vm1, %v485_v4 }
  0x30   :  { %473 = vmatprep.mubr.msk.bf16.mxu0 %vm555_vm0, %v554_v0  ;;  %442 = vmatpush3.bf16.msra.mxu1 %v488_v6 }
  0x31   :  { %443 = vmatprep.subr.bf16.mxu1 %v554_v0  ;;  %458 = vmatpush3.bf16.msra.mxu0 %v494_v12 }
  0x32   :  { %459 = vmatprep.subr.bf16.mxu0 %v554_v0 }
  0x34   :  { %444 = vmatpush3.bf16.msra.mxu1 %v489_v7 }
  0x35   :  { %445 = vmatprep.subr.bf16.mxu1 %v554_v0  ;;  %460 = vmatpush3.bf16.msra.mxu0 %v495_v13 }
  0x36   :  { %461 = vmatprep.subr.bf16.mxu0 %v554_v0 }
  0x38   :  { %446 = vmatpush3.bf16.msra.mxu1 %v490_v8 }
  0x39   :  { %447 = vmatprep.subr.bf16.mxu1 %v554_v0  ;;  %462 = vmatpush3.bf16.msra.mxu0 %v496_v14 }
  0x3a   :  { %463 = vmatprep.subr.bf16.mxu0 %v554_v0 }
  0x3c   :  { %448 = vmatpush3.bf16.msra.mxu1 %v491_v9 }
  0x3d   :  { %449 = vmatprep.subr.bf16.mxu1 %v554_v0  ;;  %464 = vmatpush3.bf16.msra.mxu0 %v497_v15 }
  0x3e   :  { %465 = vmatprep.subr.bf16.mxu0 %v554_v0 }
  0x40   :  { %450 = vmatpush3.bf16.msra.mxu1 %v492_v10 }
  0x41   :  { %451 = vmatprep.subr.bf16.mxu1 %v554_v0  ;;  %466 = vmatpush3.bf16.msra.mxu0 %v498_v16 }
  0x42   :  { %467 = vmatprep.subr.bf16.mxu0 %v554_v0 }
  0x44   :  { %452 = vmatpush3.bf16.msra.mxu1 %v493_v11 }
  0x45   :  { %468 = vmatpush3.bf16.msra.mxu0 %v499_v17 }
  0x46   :  { %469 = vmatprep.subr.bf16.mxu0 %v554_v0 }
  0x49   :  { %470 = vmatpush3.bf16.msra.mxu0 %v500_v28 }
  0x4a   :  { %471 = vmatprep.subr.bf16.mxu0 %v554_v0 }
  0x4d   :  { %472 = vmatpush3.bf16.msra.mxu0 %v501_v29 }
 0x102   :  { %v123_v19 = vpop.f32.mrb[0].mxu0 }
 0x103   :  { %v124_v20 = vadd.f32 %v376_v18, %v123_v19  ;;  %v435_v21 = vpop.f32.mrb[1].mxu0 }
 0x104   :  { %v126_v22 = vpop.f32.mrb[2].mxu0 }
 0x105   :  { %v127_v23 = vadd.f32 %v376_v18, %v126_v22  ;;  %v436_v24 = vpop.f32.mrb[3].mxu0  ;;  %v130_v25 = vmax.f32 %v124_v20, 0.0 }
 0x107   :  { %v131_v26 = vmax.f32 %v127_v23, 0.0 }
 0x109   :  { %v149_v27 = vpack.c.bf16 %v131_v26, %v130_v25 }
 0x10b   :  { %454 = vmatmul.mubr.bf16.vlgmr.msra.gmra.mrb[0].mxu1 %v149_v27 }
 0x1de   :  { %v238_v31 = vpop.f32.mrb[0].mxu1 }
 0x1df   :  { %v239_v32 = vadd.f32 %v381_v30, %v238_v31  ;;  %v455_v33 = vpop.f32.mrb[1].mxu1 }
 0x1e0   :  { %v241_v34 = vpop.f32.mrb[2].mxu1 }
 0x1e1   :  { %v242_v35 = vadd.f32 %v381_v30, %v241_v34  ;;  %v456_v36 = vpop.f32.mrb[3].mxu1  ;;  %v245_v37 = vmax.f32 %v239_v32, 0.0 }
 0x1e3   :  { %v246_v38 = vmax.f32 %v242_v35, 0.0 }
 0x1e5   :  { %v264_v39 = vpack.c.bf16 %v246_v38, %v245_v37 }
 0x1e7   :  { %474 = vmatmul.mubr.bf16.vlgmr.msra.gmra.mrb[4].mxu0 %v264_v39 }
 0x2ba   :  { %v353_v41 = vpop.f32.mrb[4].mxu0 }
 0x2bb   :  { %v475_v42 = vpop.f32.mrb[5].mxu0  ;;  %v354_v44 = vadd.f32 %v390_v40, %v353_v41 }
 0x2bc   :  { %v356_v43 = vpop.f32.mrb[6].mxu0 }
 0x2bd   :  { %v357_v45 = vadd.f32 %v390_v40, %v356_v43  ;;  %v476_v46 = vpop.f32.mrb[7].mxu0 }
 0x2bf   :  { %v406_v47 = vpack.c.bf16 %v357_v45, %v354_v44 }
 0x2c1   :  { %407 = vst [vmem:[%s672_s7] sm:$0xff] %v406_v47  }
 0x2c2   :  { %374 = vsyncpa [#allocation3], 1 }
 0x2c3   :  { %375 = vsyncpa [#allocation5], 1 }

</bundles_post_ra>
